<compile_context>
chip_gen: v6e
topology: v6e:2x2x1
jax: 0.10.0
libtpu: 0.0.40
codegen_flags: <defaults>
</compile_context>

<pallas_src>
import jax
import jax.numpy as jnp
from jax.experimental import pallas as pl
from jax.experimental.pallas import tpu as pltpu


def _round_up(x, m):
    return ((x + m - 1) // m) * m


def _conv_mm_kernel(a_ref, b_ref, bias_ref, o_ref):
    # One MXU matmul per (TM, K_pad) tile, f32 accumulation, bias add, f32 store.
    acc = jnp.dot(a_ref[...], b_ref[...], preferred_element_type=jnp.float32)
    o_ref[...] = acc + bias_ref[...]


def conv2d_pallas(x_nchw, w_oikk, b_o, *, stride, padding):
    """2-D convolution (cross-correlation, PyTorch semantics) via im2col + tiled Pallas matmul."""
    N, Cin, H, W = x_nchw.shape
    Cout, Cin_w, KH, KW = w_oikk.shape
    assert Cin == Cin_w
    OH = (H + 2 * padding - KH) // stride + 1
    OW = (W + 2 * padding - KW) // stride + 1

    # ---- im2col (built in bf16 to halve HBM traffic of the intermediate) ----
    # NCHW -> NHWC, pad spatial dims.
    x = jnp.transpose(x_nchw, (0, 2, 3, 1))
    x = jnp.pad(x, ((0, 0), (padding, padding), (padding, padding), (0, 0)))
    x = x.astype(jnp.bfloat16)

    cols = []
    for kh in range(KH):
        for kw in range(KW):
            cols.append(
                x[:, kh:kh + stride * OH:stride, kw:kw + stride * OW:stride, :]
            )  # (N, OH, OW, Cin)
    # (N, OH, OW, KH*KW, Cin) -> (N*OH*OW, KH*KW*Cin); K index order = (kh, kw, c)
    patches = jnp.stack(cols, axis=3)
    M = N * OH * OW
    K = KH * KW * Cin
    A = patches.reshape(M, K)

    # ---- padding for TPU-friendly tiles ----
    K_pad = _round_up(K, 8)            # 147 -> 152 (sublane alignment; do NOT pad to 256)
    COUT_PAD = _round_up(Cout, 128)    # 96  -> 128 (lane-dense unmasked stores)

    TM = min(512, _round_up(M, 8))     # M tile; multiple of 8, <= 512
    M_pad = _round_up(M, TM)

    A = jnp.pad(A, ((0, M_pad - M), (0, K_pad - K)))

    # Weight (Cout, Cin, KH, KW) -> (KH, KW, Cin, Cout) -> (K, Cout); matches A's K order.
    B = jnp.transpose(w_oikk, (2, 3, 1, 0)).reshape(K, Cout).astype(jnp.bfloat16)
    B = jnp.pad(B, ((0, K_pad - K), (0, COUT_PAD - Cout)))
    bias = jnp.pad(b_o.reshape(1, Cout), ((0, 0), (0, COUT_PAD - Cout))).astype(jnp.float32)

    grid = (M_pad // TM,)

    out = pl.pallas_call(
        _conv_mm_kernel,
        out_shape=jax.ShapeDtypeStruct((M_pad, COUT_PAD), jnp.float32),
        grid=grid,
        in_specs=[
            pl.BlockSpec((TM, K_pad), lambda i: (i, 0)),        # A tile, streamed over M
            pl.BlockSpec((K_pad, COUT_PAD), lambda i: (0, 0)),  # B, resident
            pl.BlockSpec((1, COUT_PAD), lambda i: (0, 0)),      # bias, resident
        ],
        out_specs=pl.BlockSpec((TM, COUT_PAD), lambda i: (i, 0)),
        compiler_params=pltpu.CompilerParams(
            dimension_semantics=("parallel",),      # shard M tiles across TCs on v7x
            vmem_limit_bytes=32 * 1024 * 1024,      # tiles are small; safe on v5e/v6e/v7x
        ),
    )(A, B, bias)

    # Slice off padding, (M, Cout) -> NCHW.
    out = out[:M, :Cout].reshape(N, OH, OW, Cout)
    return jnp.transpose(out, (0, 3, 1, 2))


def depth_forward(image, conv1_w, conv1_b):
    """Equivalent of depth.forward(): conv1(image)."""
    return conv2d_pallas(image, conv1_w, conv1_b, stride=4, padding=2)


def _reference_conv(image, w, b, stride, padding):
    out = jax.lax.conv_general_dilated(
        image, w,
        window_strides=(stride, stride),
        padding=[(padding, padding), (padding, padding)],
        dimension_numbers=("NCHW", "OIHW", "NCHW"),
        precision=jax.lax.Precision.HIGHEST,
    )
    return out + b.reshape(1, -1, 1, 1)


if __name__ == "__main__":
    key = jax.random.PRNGKey(0)
    k_img, k_w, k_b = jax.random.split(key, 3)

    # Small shapes consistent with the module: NCHW image, conv1 = 3->96, k=7, s=4, p=2.
    N, Cin, H, W = 2, 3, 32, 32
    Cout, KH, KW = 96, 7, 7

    image = jax.random.normal(k_img, (N, Cin, H, W), dtype=jnp.float32)
    conv1_w = 0.1 * jax.random.normal(k_w, (Cout, Cin, KH, KW), dtype=jnp.float32)
    conv1_b = 0.1 * jax.random.normal(k_b, (Cout,), dtype=jnp.float32)

    out = depth_forward(image, conv1_w, conv1_b)
    out = jax.block_until_ready(out)

    OH = (H + 4 - KH) // 4 + 1
    OW = (W + 4 - KW) // 4 + 1
    assert out.shape == (N, Cout, OH, OW), out.shape

    # Strict check: same bf16-rounded inputs, f32-accumulated reference conv.
    img_bf = image.astype(jnp.bfloat16).astype(jnp.float32)
    w_bf = conv1_w.astype(jnp.bfloat16).astype(jnp.float32)
    ref_bf = jax.block_until_ready(_reference_conv(img_bf, w_bf, conv1_b, 4, 2))
    err_strict = float(jnp.max(jnp.abs(out - ref_bf)))
    if err_strict > 1e-3:
        raise AssertionError(f"mismatch vs bf16-input reference conv, max_err={err_strict}")

    # Loose sanity check against the full-f32 reference (bf16 input rounding only).
    ref_f32 = jax.block_until_ready(_reference_conv(image, conv1_w, conv1_b, 4, 2))
    err_loose = float(jnp.max(jnp.abs(out - ref_f32)))
    if err_loose > 1e-1:
        raise AssertionError(f"mismatch vs f32 reference conv, max_err={err_loose}")

    print("KERNEL_OK")
</pallas_src>

<mosaic_0001>
module attributes {stable_mosaic.version = 11 : i64} {
  func.func @_conv_mm_kernel(%arg0: i32, %arg1: memref<128x152xbf16, #tpu.memory_space<vmem>>, %arg2: memref<152x128xbf16, #tpu.memory_space<vmem>>, %arg3: memref<1x128xf32, #tpu.memory_space<vmem>>, %arg4: memref<128x128xf32, #tpu.memory_space<vmem>>) attributes {dimension_semantics = [#tpu.dimension_semantics<parallel>], iteration_bounds = array<i64: 1>, scalar_prefetch = 0 : i64, scratch_operands = 0 : i64, tpu.core_type = #tpu.core_type<tc>, window_params = [{transform_indices = @transform_0, window_bounds = array<i64: 128, 152>}, {pipeline_mode = #tpu.pipeline_mode<synchronous>, transform_indices = @transform_1, window_bounds = array<i64: 152, 128>}, {pipeline_mode = #tpu.pipeline_mode<synchronous>, transform_indices = @transform_2, window_bounds = array<i64: 1, 128>}, {transform_indices = @transform_3, window_bounds = array<i64: 128, 128>}]} {
    %c0 = arith.constant 0 : index
    %c0_0 = arith.constant 0 : index
    %0 = vector.load %arg1[%c0, %c0_0] : memref<128x152xbf16, #tpu.memory_space<vmem>>, vector<128x152xbf16>
    %c0_1 = arith.constant 0 : index
    %c0_2 = arith.constant 0 : index
    %1 = vector.load %arg2[%c0_1, %c0_2] : memref<152x128xbf16, #tpu.memory_space<vmem>>, vector<152x128xbf16>
    %cst = arith.constant dense<0.000000e+00> : vector<128x128xf32>
    %2 = tpu.matmul %0, %1, %cst {dimension_numbers = #tpu.dot_dimension_numbers<[1], [0], [0], [1], [0, 0, 1, 1], [], []>} : vector<128x152xbf16>, vector<152x128xbf16>, vector<128x128xf32> -> vector<128x128xf32>
    %c0_3 = arith.constant 0 : index
    %c0_4 = arith.constant 0 : index
    %3 = vector.load %arg3[%c0_3, %c0_4] : memref<1x128xf32, #tpu.memory_space<vmem>>, vector<1x128xf32>
    %4 = vector.broadcast %3 : vector<1x128xf32> to vector<128x128xf32>
    %5 = arith.addf %2, %4 : vector<128x128xf32>
    %c0_5 = arith.constant 0 : index
    %c0_6 = arith.constant 0 : index
    %6 = vector.load %arg4[%c0_5, %c0_6] : memref<128x128xf32, #tpu.memory_space<vmem>>, vector<128x128xf32>
    tpu.vector_store %arg4[%c0_5, %c0_6], %5 {strides = array<i32>} : memref<128x128xf32, #tpu.memory_space<vmem>>, vector<128x128xf32>,
    return
  }
  func.func @transform_0(%arg0: i32) -> (i32, i32) {
    %c0_i32 = arith.constant 0 : i32
    %c0_i32_0 = arith.constant 0 : i32
    return %arg0, %c0_i32 : i32, i32
  }
  func.func @transform_1(%arg0: i32) -> (i32, i32) {
    %c0_i32 = arith.constant 0 : i32
    %c0_i32_0 = arith.constant 0 : i32
    %c0_i32_1 = arith.constant 0 : i32
    return %c0_i32, %c0_i32_0 : i32, i32
  }
  func.func @transform_2(%arg0: i32) -> (i32, i32) {
    %c0_i32 = arith.constant 0 : i32
    %c0_i32_0 = arith.constant 0 : i32
    %c0_i32_1 = arith.constant 0 : i32
    return %c0_i32, %c0_i32_0 : i32, i32
  }
  func.func @transform_3(%arg0: i32) -> (i32, i32) {
    %c0_i32 = arith.constant 0 : i32
    %c0_i32_0 = arith.constant 0 : i32
    return %arg0, %c0_i32 : i32, i32
  }
}

</mosaic_0001>

<bundles_post_ra>
// kernel: tpu_custom_call.1
= control target key start
LH: loop header
LB: loop body
LE: loop exit
PB: predicated region body
PF: predicated region fallthrough
CT: control target
= control target key end

     0   :  { %v460_v1 = vmov 0   ;;  %vm187_vm0 = vcmask 195584   ;;  %s594_s0 = inlined_call_operand.vmem [shape: bf16[128,152], index: 0, kind: input, shape index: {}]   ;;  %s595_s1 = inlined_call_operand.vmem [shape: bf16[152,128], index: 1, kind: input, shape index: {}]   ;;  %s596_s2 = inlined_call_operand.vmem [shape: f32[1,128], index: 2, kind: input, shape index: {}]   ;;  %s597_s3 = inlined_call_operand.hbm [shape: f32[128,128], index: 3, kind: output, shape index: {}]  }
   0x1   :  { %v404_v0 = vld [vmem:[%s595_s1 + $0x38] sm:$0xff]   ;;  %216 = vmatprep.subr.bf16.mxu0 %v460_v1  ;;  %380 = vmatprep.subr.bf16.mxu1 %v460_v1  ;;  %v405_v2 = vld [vmem:[%s595_s1 + $0x30] sm:$0xff]   ;;  %v406_v3 = vld [vmem:[%s595_s1 + $0x28] sm:$0xff]  }
   0x2   :  { %217 = vmatpush1.bf16.msra.mxu0 %v404_v0  ;;  %390 = vmatpush1.bf16.msra.mxu1 %v404_v0  ;;  %v407_v4 = vld [vmem:[%s595_s1 + $0x20] sm:$0xff]   ;;  %v408_v7 = vld [vmem:[%s595_s1 + $0x18] sm:$0xff]   ;;  %v409_v8 = vld [vmem:[%s595_s1 + $0x10] sm:$0xff]  }
   0x3   :  { %218 = vmatprep.subr.bf16.mxu0 %v460_v1  ;;  %381 = vmatprep.subr.bf16.mxu1 %v460_v1  ;;  %v416_v5 = vld [vmem:[%s594_s0 + $0x4] ss:$8 sps:$4 sm:$0xff]  }
   0x4   :  { %372 = vmatprep.mubr.msk.bf16.mxu0 %vm187_vm0, %v416_v5  ;;  %v419_v6 = vld [vmem:[%s594_s0 + $0x44] ss:$8 sps:$4 sm:$0xff]  }
   0x5   :  { %376 = vmatprep.mubr.msk.bf16.mxu1 %vm187_vm0, %v419_v6 }
   0x6   :  { %219 = vmatpush1.bf16.msra.mxu0 %v405_v2  ;;  %391 = vmatpush1.bf16.msra.mxu1 %v405_v2 }
   0x7   :  { %220 = vmatprep.subr.bf16.mxu0 %v460_v1  ;;  %382 = vmatprep.subr.bf16.mxu1 %v460_v1 }
   0xa   :  { %221 = vmatpush1.bf16.msra.mxu0 %v406_v3  ;;  %392 = vmatpush1.bf16.msra.mxu1 %v406_v3 }
   0xb   :  { %222 = vmatprep.subr.bf16.mxu0 %v460_v1  ;;  %383 = vmatprep.subr.bf16.mxu1 %v460_v1 }
   0xe   :  { %223 = vmatpush1.bf16.msra.mxu0 %v407_v4  ;;  %393 = vmatpush1.bf16.msra.mxu1 %v407_v4 }
   0xf   :  { %224 = vmatprep.subr.bf16.mxu0 %v460_v1  ;;  %384 = vmatprep.subr.bf16.mxu1 %v460_v1 }
  0x12   :  { %225 = vmatpush1.bf16.msra.mxu0 %v408_v7  ;;  %394 = vmatpush1.bf16.msra.mxu1 %v408_v7 }
  0x13   :  { %226 = vmatprep.subr.bf16.mxu0 %v460_v1  ;;  %385 = vmatprep.subr.bf16.mxu1 %v460_v1 }
  0x14   :  { %8 = vsyncpa [#allocation3], 0  ;;  %v410_v9 = vld [vmem:[%s595_s1 + $0x8] sm:$0xff]   ;;  %v411_v10 = vld [vmem:[%s595_s1] sm:$0xff]   ;;  %vm212_vm1 = vcmask 1043456  }
  0x15   :  { %v412_v11 = vld [vmem:[%s595_s1 + $0x48] ss:$0 sps:$4 sm:$0xff]   ;;  %v413_v13 = vld [vmem:[%s595_s1 + $0x40] sm:$0xff]   ;;  %v420_v16 = vld [vmem:[%s594_s0 + $0x14] ss:$8 sps:$4 sm:$0xff]  }
  0x16   :  { %227 = vmatpush1.bf16.msra.mxu0 %v409_v8  ;;  %395 = vmatpush1.bf16.msra.mxu1 %v409_v8  ;;  %v214_v12 = vsel %vm212_vm1, %v412_v11, 0  ;;  %v414_v14 = vld [vmem:[%s594_s0] ss:$8 sps:$4 sm:$0xff]   ;;  %v422_v17 = vld [vmem:[%s594_s0 + $0x54] ss:$8 sps:$4 sm:$0xff]  }
  0x17   :  { %228 = vmatprep.subr.bf16.mxu0 %v460_v1  ;;  %386 = vmatprep.subr.bf16.mxu1 %v460_v1  ;;  %v417_v15 = vld [vmem:[%s594_s0 + $0x40] ss:$8 sps:$4 sm:$0xff]   ;;  %v424_v18 = vld [vmem:[%s594_s0 + $0x10] ss:$8 sps:$4 sm:$0xff]   ;;  %v426_v20 = vld [vmem:[%s594_s0 + $0x24] ss:$8 sps:$4 sm:$0xff]  }
  0x18   :  { %v425_v19 = vld [vmem:[%s594_s0 + $0x50] ss:$8 sps:$4 sm:$0xff]   ;;  %v428_v21 = vld [vmem:[%s594_s0 + $0x64] ss:$8 sps:$4 sm:$0xff]   ;;  %v430_v22 = vld [vmem:[%s594_s0 + $0x20] ss:$8 sps:$4 sm:$0xff]  }
  0x19   :  { %v431_v23 = vld [vmem:[%s594_s0 + $0x60] ss:$8 sps:$4 sm:$0xff]   ;;  %v432_v24 = vld [vmem:[%s594_s0 + $0x34] ss:$8 sps:$4 sm:$0xff]   ;;  %v436_v26 = vld [vmem:[%s594_s0 + $0x30] ss:$8 sps:$4 sm:$0xff]  }
  0x1a   :  { %229 = vmatpush1.bf16.msra.mxu0 %v410_v9  ;;  %396 = vmatpush1.bf16.msra.mxu1 %v410_v9  ;;  %v434_v25 = vld [vmem:[%s594_s0 + $0x74] ss:$8 sps:$4 sm:$0xff]   ;;  %v437_v27 = vld [vmem:[%s594_s0 + $0x70] ss:$8 sps:$4 sm:$0xff]   ;;  %v573_v28 = vld [vmem:[%s596_s2] ss:$0 sm:$0xff] }
  0x1b   :  { %230 = vmatprep.subr.bf16.mxu0 %v460_v1  ;;  %387 = vmatprep.subr.bf16.mxu1 %v460_v1  ;;  %s461_s0 = smov [#allocation2]  }
  0x1c   :  { %s334_s2 = sshll.u32 %s461_s0, 4  ;;  %s335_s2 = int_to_ptr.vmem [resolvable:$true] %s334_s2 }
  0x1d   :  { %s438_s11 = scalar_lea.vmem %s335_s2, 2048  ;;  %p443_p1 = scmp.lt.s32.totalorder %s335_s2, %s335_s2 }
  0x1e   :  { %231 = vmatpush1.bf16.msra.mxu0 %v411_v10  ;;  %397 = vmatpush1.bf16.msra.mxu1 %v411_v10  ;;  %p439_p0 = scmp.ne.s32.totalorder %s335_s2, %s438_s11  ;;  %p444_p2 = scmp.lt.s32.totalorder %s438_s11, %s438_s11 }
  0x1f   :  { %244 = vmatprep.subr.bf16.mxu0 %v460_v1  ;;  %388 = vmatprep.subr.bf16.mxu1 %v460_v1 }
  0x20   :  { %p445_p3 = por %p444_p2, %p443_p1 }
  0x22   :  { %245 = vmatpush2.bf16.msra.mxu0 %v214_v12  ;;  %398 = vmatpush2.bf16.msra.mxu1 %v214_v12  ;;  %p446_p4 = pnand %p445_p3, %p439_p0 }
  0x23   :  { %246 = vmatprep.subr.bf16.mxu0 %v460_v1  ;;  %389 = vmatprep.subr.bf16.mxu1 %v460_v1 }
  0x26   :  { %247 = vmatpush2.bf16.msra.mxu0 %v413_v13  ;;  %399 = vmatpush2.bf16.msra.mxu1 %v413_v13 }
  0x29   :  { %249 = vmatmul.mubr.bf16.vlgmr.msra.gmra.mxu0 %v414_v14  ;;  %281 = vmatmul.mubr.bf16.vlgmr.msra.gmra.mxu1 %v417_v15 }
  0x2a   :  { %373 = vmatprep.mubr.msk.bf16.mxu0 %vm187_vm0, %v420_v16  ;;  %377 = vmatprep.mubr.msk.bf16.mxu1 %vm187_vm0, %v422_v17 }
  0x31   :  { %257 = vmatmul.mubr.bf16.gmra.mxu0 %v424_v18  ;;  %289 = vmatmul.mubr.bf16.gmra.mxu1 %v425_v19 }
  0x32   :  { %374 = vmatprep.mubr.msk.bf16.mxu0 %vm187_vm0, %v426_v20  ;;  %378 = vmatprep.mubr.msk.bf16.mxu1 %vm187_vm0, %v428_v21 }
  0x39   :  { %265 = vmatmul.mubr.bf16.gmra.mxu0 %v430_v22  ;;  %297 = vmatmul.mubr.bf16.gmra.mxu1 %v431_v23 }
  0x3a   :  { %375 = vmatprep.mubr.msk.bf16.mxu0 %vm187_vm0, %v432_v24  ;;  %379 = vmatprep.mubr.msk.bf16.mxu1 %vm187_vm0, %v434_v25 }
  0x41   :  { %273 = vmatmul.mubr.bf16.gmra.mxu0 %v436_v26  ;;  %305 = vmatmul.mubr.bf16.gmra.mxu1 %v437_v27 }
  0xe9   :  { %v250_v29 = vpop.f32.mrf.mxu0  ;;  %v282_v30 = vpop.f32.mrf.mxu1 }
  0xea   :  { %v251_v31 = vadd.f32 %v573_v28, %v250_v29  ;;  %v283_v32 = vadd.f32 %v573_v28, %v282_v30 }
  0xeb   :  { %v252_v33 = vpop.f32.mrf.mxu0  ;;  %v284_v34 = vpop.f32.mrf.mxu1 }
  0xec   :  { %313 = vst [vmem:[#allocation2] sm:$0xff] %v251_v31  ;;  %321 = vst [vmem:[#allocation2 + $0x40] sm:$0xff] %v283_v32 }
  0xed   :  { %v253_v35 = vpop.f32.mrf.mxu0  ;;  %v285_v36 = vpop.f32.mrf.mxu1 }
  0xee   :  { %v254_v37 = vadd.f32 %v573_v28, %v253_v35  ;;  %v286_v38 = vadd.f32 %v573_v28, %v285_v36 }
  0xef   :  { %v255_v39 = vpop.f32.mrf.mxu0  ;;  %v287_v40 = vpop.f32.mrf.mxu1 }
  0xf0   :  { %314 = vst [vmem:[#allocation2 + $0x8] sm:$0xff] %v254_v37  ;;  %322 = vst [vmem:[#allocation2 + $0x48] sm:$0xff] %v286_v38 }
  0xf1   :  { %v258_v41 = vpop.f32.mrf.mxu0  ;;  %v290_v42 = vpop.f32.mrf.mxu1 }
  0xf2   :  { %v259_v43 = vadd.f32 %v573_v28, %v258_v41  ;;  %v291_v44 = vadd.f32 %v573_v28, %v290_v42 }
  0xf3   :  { %v260_v45 = vpop.f32.mrf.mxu0  ;;  %v292_v46 = vpop.f32.mrf.mxu1 }
  0xf4   :  { %315 = vst [vmem:[#allocation2 + $0x10] sm:$0xff] %v259_v43  ;;  %323 = vst [vmem:[#allocation2 + $0x50] sm:$0xff] %v291_v44 }
  0xf5   :  { %v261_v47 = vpop.f32.mrf.mxu0  ;;  %v293_v48 = vpop.f32.mrf.mxu1 }
  0xf6   :  { %v262_v49 = vadd.f32 %v573_v28, %v261_v47  ;;  %v294_v50 = vadd.f32 %v573_v28, %v293_v48 }
  0xf7   :  { %v263_v51 = vpop.f32.mrf.mxu0  ;;  %v295_v52 = vpop.f32.mrf.mxu1 }
  0xf8   :  { %316 = vst [vmem:[#allocation2 + $0x18] sm:$0xff] %v262_v49  ;;  %324 = vst [vmem:[#allocation2 + $0x58] sm:$0xff] %v294_v50 }
  0xf9   :  { %v266_v53 = vpop.f32.mrf.mxu0  ;;  %v298_v54 = vpop.f32.mrf.mxu1 }
  0xfa   :  { %v267_v55 = vadd.f32 %v573_v28, %v266_v53  ;;  %v299_v56 = vadd.f32 %v573_v28, %v298_v54 }
  0xfb   :  { %v268_v57 = vpop.f32.mrf.mxu0  ;;  %v300_v58 = vpop.f32.mrf.mxu1 }
  0xfc   :  { %317 = vst [vmem:[#allocation2 + $0x20] sm:$0xff] %v267_v55  ;;  %325 = vst [vmem:[#allocation2 + $0x60] sm:$0xff] %v299_v56 }
  0xfd   :  { %v269_v59 = vpop.f32.mrf.mxu0  ;;  %v301_v60 = vpop.f32.mrf.mxu1 }
  0xfe   :  { %v270_v61 = vadd.f32 %v573_v28, %v269_v59  ;;  %v302_v62 = vadd.f32 %v573_v28, %v301_v60 }
  0xff   :  { %v271_v63 = vpop.f32.mrf.mxu0  ;;  %v303_v0 = vpop.f32.mrf.mxu1 }
 0x100   :  { %318 = vst [vmem:[#allocation2 + $0x28] sm:$0xff] %v270_v61  ;;  %326 = vst [vmem:[#allocation2 + $0x68] sm:$0xff] %v302_v62 }
 0x101   :  { %v274_v1 = vpop.f32.mrf.mxu0  ;;  %v306_v2 = vpop.f32.mrf.mxu1 }
 0x102   :  { %v275_v3 = vadd.f32 %v573_v28, %v274_v1  ;;  %v307_v4 = vadd.f32 %v573_v28, %v306_v2 }
 0x103   :  { %v276_v5 = vpop.f32.mrf.mxu0  ;;  %v308_v6 = vpop.f32.mrf.mxu1 }
 0x104   :  { %319 = vst [vmem:[#allocation2 + $0x30] sm:$0xff] %v275_v3  ;;  %327 = vst [vmem:[#allocation2 + $0x70] sm:$0xff] %v307_v4 }
 0x105   :  { %v277_v7 = vpop.f32.mrf.mxu0  ;;  %v309_v8 = vpop.f32.mrf.mxu1 }
 0x106   :  { %v278_v9 = vadd.f32 %v573_v28, %v277_v7  ;;  %v310_v10 = vadd.f32 %v573_v28, %v309_v8 }
 0x107   :  { %v279_v11 = vpop.f32.mrf.mxu0  ;;  %v311_v12 = vpop.f32.mrf.mxu1 }
 0x108   :  { %320 = vst [vmem:[#allocation2 + $0x38] sm:$0xff] %v278_v9  ;;  %328 = vst [vmem:[#allocation2 + $0x78] sm:$0xff] %v310_v10 }
 0x109   :  { %449 = shalt.err (!%p446_p4)
}
 0x10a   :  { %s462_s12 = smov 128   ;;  %s463_s13 = smov 8  }
 0x10b   :  { %340 = dma.vmem_to_hbm [thread:$0]  %s335_s2, 2048, %s597_s3, [#allocation3], %s462_s12, %s462_s12, %s463_s13  }
 0x10c   :  { %458 = dma.done.wait [#allocation3], 2048  }
 0x10d   :  { %459 = vsyncadd [#allocation3], 4294965248 }
 0x10e   :  { %344 = vsyncpa [#allocation3], 1 }

</bundles_post_ra>
